<compile_context>
chip_gen: v7x
topology: tpu7x:2x2x1
jax: 0.10.0
libtpu: 0.0.40
codegen_flags: <defaults>
</compile_context>

<pallas_src>
import jax
import jax.numpy as jnp
from jax.experimental import pallas as pl
from jax.experimental.pallas import tpu as pltpu


# ----------------------------------------------------------------------------
# Kernel 1: input projection  y = x @ W_ih^T + (b_ih + b_hh)   (all timesteps)
# ----------------------------------------------------------------------------
def input_proj_kernel(x_ref, w_ref, b_ref, o_ref):
    # x_ref: (tm, E), w_ref: (E, 4H) resident, b_ref: (1, 4H), o_ref: (tm, 4H)
    acc = jnp.dot(x_ref[...], w_ref[...], preferred_element_type=jnp.float32)
    o_ref[...] = (acc + b_ref[...].astype(jnp.float32)).astype(o_ref.dtype)


def input_projection(x2, w_ih_t, bias, *, tm=512):
    """x2: (M, E); w_ih_t: (E, 4H); bias: (1, 4H) -> (M, 4H)."""
    M, E = x2.shape
    N = w_ih_t.shape[1]

    # cdiv-based grid + row padding: no divisibility asserts, big default tile
    # (memory-bound kernel -> large row tiles amortise per-step overhead).
    tm = int(min(tm, pl.cdiv(M, 8) * 8))
    Mp = int(pl.cdiv(M, tm) * tm)
    if Mp != M:
        x2 = jnp.pad(x2, ((0, Mp - M), (0, 0)))

    out = pl.pallas_call(
        input_proj_kernel,
        out_shape=jax.ShapeDtypeStruct((Mp, N), x2.dtype),
        grid_spec=pltpu.PrefetchScalarGridSpec(
            num_scalar_prefetch=0,
            grid=(Mp // tm,),
            in_specs=[
                pl.BlockSpec((tm, E), lambda i: (i, 0)),   # activations tile
                pl.BlockSpec((E, N), lambda i: (0, 0)),    # weight (resident)
                # TODO(synk): for very large E / H, add a K-reduction grid axis
                # ("arbitrary") with a VMEM accumulator instead of a fully
                # resident weight (v7x has only 64 MiB VMEM).
                pl.BlockSpec((1, N), lambda i: (0, 0)),    # fused bias
            ],
            out_specs=pl.BlockSpec((tm, N), lambda i: (i, 0)),
        ),
        compiler_params=pltpu.CompilerParams(
            dimension_semantics=("parallel",)),
    )(x2, w_ih_t, bias)
    return out[:M]


# ----------------------------------------------------------------------------
# Kernel 2: masked LSTM recurrence over time (sequential grid axis)
# ----------------------------------------------------------------------------
def lstm_recurrence_kernel(xg_ref, whh_ref, lens_ref,
                           hh_ref, hT_ref, cT_ref,
                           h_sc, c_sc):
    # xg_ref : (1, B, 4H) precomputed x_t @ W_ih^T + biases (this timestep)
    # whh_ref: (H, 4H)    recurrent weight, resident in VMEM
    # lens_ref: (B, 1)    int32 sequence lengths
    # hh_ref : (1, B, H)  per-step output slab (time-major, matches module)
    # hT_ref / cT_ref: (B, H) final states (constant block index -> written
    #                  back to HBM once at the end of the grid)
    # h_sc / c_sc: (B, H) f32 VMEM carry
    t = pl.program_id(0)

    @pl.when(t == 0)
    def _():
        h_sc[...] = jnp.zeros_like(h_sc)
        c_sc[...] = jnp.zeros_like(c_sc)

    H = h_sc.shape[-1]
    h_prev = h_sc[...]
    c_prev = c_sc[...]

    # Single lane-dense (B,H) @ (H,4H) MXU matmul for all four gates.
    gates = xg_ref[0].astype(jnp.float32) + jnp.dot(
        h_prev, whh_ref[...], preferred_element_type=jnp.float32)

    # PyTorch gate order: i, f, g, o (static lane slices).
    i = jax.nn.sigmoid(gates[:, 0 * H:1 * H])
    f = jax.nn.sigmoid(gates[:, 1 * H:2 * H])
    g = jnp.tanh(gates[:, 2 * H:3 * H])
    o = jax.nn.sigmoid(gates[:, 3 * H:4 * H])

    c_new = f * c_prev + i * g
    h_new = o * jnp.tanh(c_new)

    # pack_padded_sequence equivalence: freeze state past each sequence end,
    # zero the padded outputs.
    valid = lens_ref[...] > t                  # (B, 1) bool
    h_next = jnp.where(valid, h_new, h_prev)
    c_next = jnp.where(valid, c_new, c_prev)
    h_sc[...] = h_next
    c_sc[...] = c_next

    hh_ref[0] = jnp.where(valid, h_new, 0.0).astype(hh_ref.dtype)
    hT_ref[...] = h_next.astype(hT_ref.dtype)
    cT_ref[...] = c_next.astype(cT_ref.dtype)


def lstm_recurrence(xg, w_hh_t, lens, out_dtype):
    """xg: (T, B, 4H); w_hh_t: (H, 4H); lens: (B, 1) int32."""
    T, B, G = xg.shape
    H = G // 4
    hh, hT, cT = pl.pallas_call(
        lstm_recurrence_kernel,
        out_shape=(
            jax.ShapeDtypeStruct((T, B, H), out_dtype),
            jax.ShapeDtypeStruct((B, H), out_dtype),
            jax.ShapeDtypeStruct((B, H), out_dtype),
        ),
        grid_spec=pltpu.PrefetchScalarGridSpec(
            num_scalar_prefetch=0,
            grid=(T,),
            in_specs=[
                pl.BlockSpec((1, B, G), lambda t: (t, 0, 0)),  # x-gates slab
                pl.BlockSpec((H, G), lambda t: (0, 0)),        # W_hh^T resident
                pl.BlockSpec((B, 1), lambda t: (0, 0)),        # lengths resident
            ],
            out_specs=[
                pl.BlockSpec((1, B, H), lambda t: (t, 0, 0)),  # hh (time-major)
                pl.BlockSpec((B, H), lambda t: (0, 0)),        # h_T
                pl.BlockSpec((B, H), lambda t: (0, 0)),        # c_T
            ],
            scratch_shapes=[
                pltpu.VMEM((B, H), jnp.float32),               # h carry (f32)
                pltpu.VMEM((B, H), jnp.float32),               # c carry (f32)
            ],
        ),
        compiler_params=pltpu.CompilerParams(
            dimension_semantics=("arbitrary",)),  # true recurrence: sequential
    )(xg, w_hh_t, lens)
    return hh, hT, cT


# ----------------------------------------------------------------------------
# Wrapper: one-time param prep + EncoderRNN forward (eval mode)
# ----------------------------------------------------------------------------
def prepare_lstm_params(weight_ih, weight_hh, bias_ih, bias_hh):
    """Hoisted one-time prep: transposes + bias folding (not per-call)."""
    w_ih_t = jnp.asarray(weight_ih).T                              # (E, 4H)
    w_hh_t = jnp.asarray(weight_hh).T                              # (H, 4H)
    bias = (jnp.asarray(bias_ih) + jnp.asarray(bias_hh)).reshape(1, -1)  # (1,4H)
    return w_ih_t, w_hh_t, bias


def encoder_rnn_forward(x, x_len, params, *, tm=512):
    """x: (B, T, E); x_len: (B,) ints.
    Returns (hh (T, B, H), (h_T (1, B, H), c_T (1, B, H))) -- same as the
    PyTorch module's (restore_hh.transpose(0,1), rnn_state_t) in eval mode.
    """
    w_ih_t, w_hh_t, bias = params
    B, T, E = x.shape
    G = w_ih_t.shape[1]

    # Time-major layout so each recurrence step DMAs one contiguous (B, 4H)
    # slab and hh is stored directly in the module's (T, B, H) output layout.
    x_tm = jnp.transpose(x, (1, 0, 2))          # (T, B, E) one-time relayout
    x2 = x_tm.reshape(T * B, E)

    # Big, parallel, lane-dense matmul over all timesteps (biases fused).
    xg = input_projection(x2, w_ih_t, bias, tm=tm).reshape(T, B, G)

    lens = jnp.asarray(x_len, jnp.int32).reshape(B, 1)
    hh, hT, cT = lstm_recurrence(xg, w_hh_t, lens, x.dtype)
    # pad_packed_sequence would trim hh to max(x_len); padded steps are zeros
    # either way, so we return the full-T tensor (slice outside if desired).
    return hh, (hT[None], cT[None])


# ----------------------------------------------------------------------------
# Pure-JAX reference (masked LSTM == pack/pad semantics in eval mode)
# ----------------------------------------------------------------------------
def encoder_rnn_ref(x, x_len, w_ih, w_hh, b_ih, b_hh):
    B, T, E = x.shape
    H = w_hh.shape[1]

    def step(carry, inputs):
        h, c = carry
        x_t, t = inputs
        gates = x_t @ w_ih.T + b_ih + h @ w_hh.T + b_hh
        i, f, g, o = jnp.split(gates, 4, axis=-1)
        i, f, o = jax.nn.sigmoid(i), jax.nn.sigmoid(f), jax.nn.sigmoid(o)
        g = jnp.tanh(g)
        c_new = f * c + i * g
        h_new = o * jnp.tanh(c_new)
        valid = (x_len > t)[:, None]
        h = jnp.where(valid, h_new, h)
        c = jnp.where(valid, c_new, c)
        return (h, c), jnp.where(valid, h_new, 0.0)

    h0 = jnp.zeros((B, H), x.dtype)
    c0 = jnp.zeros((B, H), x.dtype)
    (hT, cT), hh = jax.lax.scan(
        step, (h0, c0), (jnp.transpose(x, (1, 0, 2)), jnp.arange(T)))
    return hh, (hT[None], cT[None])


if __name__ == "__main__":
    B, T, E, H = 2, 8, 16, 32   # batch=2, seq=8, input=16, hidden=32

    key = jax.random.PRNGKey(0)
    kx, kwi, kwh, kbi, kbh = jax.random.split(key, 5)

    x = jax.random.normal(kx, (B, T, E), dtype=jnp.float32)
    x_len = jnp.array([8, 5], dtype=jnp.int32)

    # nn.LSTM parameter layout: weight_ih (4H, E), weight_hh (4H, H), biases (4H,)
    bound = 1.0 / jnp.sqrt(float(H))
    w_ih = jax.random.uniform(kwi, (4 * H, E), jnp.float32, -bound, bound)
    w_hh = jax.random.uniform(kwh, (4 * H, H), jnp.float32, -bound, bound)
    b_ih = jax.random.uniform(kbi, (4 * H,), jnp.float32, -bound, bound)
    b_hh = jax.random.uniform(kbh, (4 * H,), jnp.float32, -bound, bound)

    params = prepare_lstm_params(w_ih, w_hh, b_ih, b_hh)
    hh, (h_t, c_t) = encoder_rnn_forward(x, x_len, params)
    hh = jax.block_until_ready(hh)

    hh_ref, (h_ref, c_ref) = encoder_rnn_ref(x, x_len, w_ih, w_hh, b_ih, b_hh)

    assert hh.shape == (T, B, H)
    assert h_t.shape == (1, B, H) and c_t.shape == (1, B, H)
    assert jnp.allclose(hh, hh_ref, atol=1e-5, rtol=1e-5), "hh mismatch"
    assert jnp.allclose(h_t, h_ref, atol=1e-5, rtol=1e-5), "h_T mismatch"
    assert jnp.allclose(c_t, c_ref, atol=1e-5, rtol=1e-5), "c_T mismatch"

    print("KERNEL_OK")
</pallas_src>

<mosaic_0001>
module attributes {stable_mosaic.version = 11 : i64} {
  func.func @input_proj_kernel(%arg0: i32, %arg1: memref<16x16xf32, #tpu.memory_space<vmem>>, %arg2: memref<16x128xf32, #tpu.memory_space<vmem>>, %arg3: memref<1x128xf32, #tpu.memory_space<vmem>>, %arg4: memref<16x128xf32, #tpu.memory_space<vmem>>) attributes {dimension_semantics = [#tpu.dimension_semantics<parallel>], iteration_bounds = array<i64: 1>, scalar_prefetch = 0 : i64, scratch_operands = 0 : i64, tpu.core_type = #tpu.core_type<tc>, window_params = [{transform_indices = @transform_0, window_bounds = array<i64: 16, 16>}, {pipeline_mode = #tpu.pipeline_mode<synchronous>, transform_indices = @transform_1, window_bounds = array<i64: 16, 128>}, {pipeline_mode = #tpu.pipeline_mode<synchronous>, transform_indices = @transform_2, window_bounds = array<i64: 1, 128>}, {transform_indices = @transform_3, window_bounds = array<i64: 16, 128>}]} {
    %c0 = arith.constant 0 : index
    %c0_0 = arith.constant 0 : index
    %0 = vector.load %arg1[%c0, %c0_0] : memref<16x16xf32, #tpu.memory_space<vmem>>, vector<16x16xf32>
    %c0_1 = arith.constant 0 : index
    %c0_2 = arith.constant 0 : index
    %1 = vector.load %arg2[%c0_1, %c0_2] : memref<16x128xf32, #tpu.memory_space<vmem>>, vector<16x128xf32>
    %cst = arith.constant dense<0.000000e+00> : vector<16x128xf32>
    %2 = tpu.matmul %0, %1, %cst {dimension_numbers = #tpu.dot_dimension_numbers<[1], [0], [0], [1], [0, 0, 1, 1], [], []>} : vector<16x16xf32>, vector<16x128xf32>, vector<16x128xf32> -> vector<16x128xf32>
    %c0_3 = arith.constant 0 : index
    %c0_4 = arith.constant 0 : index
    %3 = vector.load %arg3[%c0_3, %c0_4] : memref<1x128xf32, #tpu.memory_space<vmem>>, vector<1x128xf32>
    %4 = vector.broadcast %3 : vector<1x128xf32> to vector<16x128xf32>
    %5 = arith.addf %2, %4 : vector<16x128xf32>
    %c0_5 = arith.constant 0 : index
    %c0_6 = arith.constant 0 : index
    %6 = vector.load %arg4[%c0_5, %c0_6] : memref<16x128xf32, #tpu.memory_space<vmem>>, vector<16x128xf32>
    tpu.vector_store %arg4[%c0_5, %c0_6], %5 {strides = array<i32>} : memref<16x128xf32, #tpu.memory_space<vmem>>, vector<16x128xf32>,
    return
  }
  func.func @transform_0(%arg0: i32) -> (i32, i32) {
    %c0_i32 = arith.constant 0 : i32
    %c0_i32_0 = arith.constant 0 : i32
    return %arg0, %c0_i32 : i32, i32
  }
  func.func @transform_1(%arg0: i32) -> (i32, i32) {
    %c0_i32 = arith.constant 0 : i32
    %c0_i32_0 = arith.constant 0 : i32
    %c0_i32_1 = arith.constant 0 : i32
    return %c0_i32, %c0_i32_0 : i32, i32
  }
  func.func @transform_2(%arg0: i32) -> (i32, i32) {
    %c0_i32 = arith.constant 0 : i32
    %c0_i32_0 = arith.constant 0 : i32
    %c0_i32_1 = arith.constant 0 : i32
    return %c0_i32, %c0_i32_0 : i32, i32
  }
  func.func @transform_3(%arg0: i32) -> (i32, i32) {
    %c0_i32 = arith.constant 0 : i32
    %c0_i32_0 = arith.constant 0 : i32
    return %arg0, %c0_i32 : i32, i32
  }
}

</mosaic_0001>

<bundles_post_ra>
// kernel: tpu_custom_call.1
= control target key start
LH: loop header
LB: loop body
LE: loop exit
PB: predicated region body
PF: predicated region fallthrough
CT: control target
= control target key end

     0   :  { %8 = vsyncpa [#allocation3], 0  ;;  %s324_s0 = inlined_call_operand.hbm [shape: f32[16,16], index: 0, kind: input, shape index: {}]   ;;  %s325_s1 = inlined_call_operand.hbm [shape: f32[16,128], index: 1, kind: input, shape index: {}]   ;;  %s326_s2 = inlined_call_operand.vmem [shape: f32[1,128], index: 2, kind: input, shape index: {}]   ;;  %s327_s3 = inlined_call_operand.hbm [shape: f32[16,128], index: 3, kind: output, shape index: {}]  }
   0x1   :  { %9 = vsyncpa [#allocation6], 0 }
   0x2   :  { %10 = vsyncpa [#allocation4], 0  ;;  %s251_s12 = smov [#allocation2]   ;;  %s179_s16 = scalar_lea.hbm %s324_s0, 256 }
   0x3   :  { %s16_s13 = sshll.u32 %s251_s12, 4  ;;  %p180_p0 = scmp.ne.s32.totalorder %s324_s0, %s179_s16  ;;  %s17_s13 = int_to_ptr.vmem [resolvable:$true] %s16_s13 }
   0x4   :  { %p183_p1 = scmp.lt.u32.totalorder %s179_s16, %s324_s0 }
   0x6   :  { %p185_p2 = pnand %p183_p1, %p180_p0 }
   0x8   :  { %188 = shalt.err (!%p185_p2)
}
   0x9   :  { %s189_s21 = scalar_lea.vmem %s17_s13, 256  ;;  %p194_p4 = scmp.lt.s32.totalorder %s17_s13, %s17_s13 }
   0xa   :  { %p190_p3 = scmp.ne.s32.totalorder %s17_s13, %s189_s21  ;;  %p195_p5 = scmp.lt.s32.totalorder %s189_s21, %s189_s21 }
   0xc   :  { %p196_p6 = por %p195_p5, %p194_p4 }
   0xe   :  { %p197_p7 = pnand %p196_p6, %p190_p3 }
  0x10   :  { %200 = shalt.err (!%p197_p7)
}
  0x11   :  { %s252_s22 = smov 128   ;;  %s253_s23 = smov 8  }
  0x12   :  { %22 = dma.hbm_to_vmem [thread:$0]  %s324_s0, 256, %s17_s13, [#allocation3], %s252_s22, %s252_s22, %s253_s23  }
  0x13   :  { %s254_s26 = smov [#allocation5]   ;;  %s201_s30 = scalar_lea.hbm %s325_s1, 256 }
  0x14   :  { %s28_s27 = sshll.u32 %s254_s26, 4  ;;  %p202_p8 = scmp.ne.s32.totalorder %s325_s1, %s201_s30  ;;  %s29_s27 = int_to_ptr.vmem [resolvable:$true] %s28_s27 }
  0x15   :  { %p205_p9 = scmp.lt.u32.totalorder %s201_s30, %s325_s1 }
  0x17   :  { %p207_p10 = pnand %p205_p9, %p202_p8 }
  0x19   :  { %210 = shalt.err (!%p207_p10)
}
  0x1a   :  { %s211_s8 = scalar_lea.vmem %s29_s27, 256  ;;  %p216_p12 = scmp.lt.s32.totalorder %s29_s27, %s29_s27 }
  0x1b   :  { %p212_p11 = scmp.ne.s32.totalorder %s29_s27, %s211_s8  ;;  %p217_p13 = scmp.lt.s32.totalorder %s211_s8, %s211_s8 }
  0x1d   :  { %p218_p0 = por %p217_p13, %p216_p12 }
  0x1f   :  { %p219_p1 = pnand %p218_p0, %p212_p11 }
  0x21   :  { %222 = shalt.err (!%p219_p1)
}
  0x22   :  { %34 = dma.hbm_to_vmem [thread:$0]  %s325_s1, 256, %s29_s27, [#allocation6], %s252_s22, %s252_s22, %s253_s23  }
  0x23   :  { %245 = dma.done.wait [#allocation3], 256  }
  0x24   :  { %246 = vsyncadd [#allocation3], 4294967040 }
  0x25   :  { %247 = dma.done.wait [#allocation6], 256  }
  0x26   :  { %248 = vsyncadd [#allocation6], 4294967040  ;;  %vm54_vm0 = vcmask 130048   ;;  %v45_v0 = vld [vmem:[#allocation5] sm:$0xff]  ;;  %v46_v1 = vld [vmem:[#allocation5 + $0x8] sm:$0xff]  ;;  %s255_s12 = smov [#allocation7]  }
  0x27   :  { %v43_v2 = vld [vmem:[#allocation2] sm:$0xff]  ;;  %v170_v3 = vpack.c.bf16 %v46_v1, %v45_v0  ;;  %v44_v4 = vld [vmem:[#allocation2 + $0x8] sm:$0xff]  ;;  %s143_s1 = sshll.u32 %s255_s12, 4  ;;  %s144_s1 = int_to_ptr.vmem [resolvable:$true] %s143_s1 }
  0x28   :  { %167 = vmatprep.mubr.msk.f32.mxu0 %vm54_vm0, %v43_v2  ;;  %v156_v5 = vld [vmem:[%s326_s2] ss:$0 sm:$0xff]  ;;  %s223_s13 = scalar_lea.vmem %s144_s1, 256  ;;  %p228_p3 = scmp.lt.s32.totalorder %s144_s1, %s144_s1 }
  0x29   :  { %171 = vmatprep.subr.bf16.mxu0 %v170_v3  ;;  %p224_p2 = scmp.ne.s32.totalorder %s144_s1, %s223_s13  ;;  %p229_p4 = scmp.lt.s32.totalorder %s223_s13, %s223_s13 }
  0x2a   :  { %173 = vmatpush3.bf16.msra.mxu0 %v170_v3 }
  0x2b   :  { %p230_p5 = por %p229_p4, %p228_p3 }
  0x2d   :  { %168 = vmatmul.mubr.msk.f32.vlgmr.msra.gmra.mrb[0].mxu0 %vm54_vm0, %v44_v4  ;;  %p231_p6 = pnand %p230_p5, %p224_p2 }
 0x100   :  { %v169_v6 = vpop.f32.mrb[0].mxu0 }
 0x101   :  { %v133_v7 = vadd.f32 %v169_v6, %v156_v5  ;;  %v127_v8 = vpop.f32.mrb[1].mxu0 }
 0x102   :  { %v128_v9 = vadd.f32 %v156_v5, %v127_v8 }
 0x103   :  { %137 = vst [vmem:[#allocation7 + $0x8] sm:$0xff] %v133_v7 }
 0x104   :  { %136 = vst [vmem:[#allocation7] sm:$0xff] %v128_v9 }
 0x105   :  { %234 = shalt.err (!%p231_p6)
}
 0x106   :  { %s235_s2 = scalar_lea.hbm %s327_s3, 256 }
 0x107   :  { %p236_p7 = scmp.ne.s32.totalorder %s327_s3, %s235_s2  ;;  %p239_p8 = scmp.lt.u32.totalorder %s235_s2, %s327_s3 }
 0x109   :  { %p241_p9 = pnand %p239_p8, %p236_p7 }
 0x10b   :  { %244 = shalt.err (!%p241_p9)
}
 0x10c   :  { %149 = dma.vmem_to_hbm [thread:$0]  %s144_s1, 256, %s327_s3, [#allocation4], %s252_s22, %s252_s22, %s253_s23  }
 0x10d   :  { %249 = dma.done.wait [#allocation4], 256  }
 0x10e   :  { %250 = vsyncadd [#allocation4], 4294967040 }
 0x10f   :  { %153 = vsyncpa [#allocation3], 1 }
 0x110   :  { %154 = vsyncpa [#allocation6], 1 }
 0x111   :  { %155 = vsyncpa [#allocation4], 1 }

</bundles_post_ra>
